<compile_context>
chip_gen: v6e
topology: v6e:2x2x1
jax: 0.10.0
libtpu: 0.0.40
codegen_flags: <defaults>
</compile_context>

<pallas_src>
import functools

import jax
import jax.numpy as jnp
from jax import lax
from jax.experimental import pallas as pl
from jax.experimental.pallas import tpu as pltpu


def _round_up(x, m):
    return ((x + m - 1) // m) * m


def _inv_pow(base, beta):
    """Computes base ** (-beta) for base >= 1 without a divide."""
    if beta == 0.75:
        # base^(-3/4) = base^(-1/2) * base^(-1/4) -- two cheap EUP ops.
        return lax.rsqrt(base) * lax.rsqrt(jnp.sqrt(base))
    if beta == 0.5:
        return lax.rsqrt(base)
    if beta == 1.0:
        return pl.reciprocal(base)
    return jnp.exp(-beta * jnp.log(base))


# ------------------- local_size == 1: lane-dense pointwise path -------------------

def _lrn_pointwise_kernel(x_ref, o_ref, *, alpha, beta):
    x = x_ref[...].astype(jnp.float32)
    base = x * x * alpha + 1.0
    o_ref[...] = (x * _inv_pow(base, beta)).astype(o_ref.dtype)


def _lrn_pointwise(x, alpha, beta):
    orig_shape = x.shape
    dtype = x.dtype
    flat = x.reshape(-1)
    total = flat.shape[0]

    LANES = 1024                                       # large multiple of 128
    rows = pl.cdiv(total, LANES)
    bytes_per_row = LANES * dtype.itemsize
    target_rows = max(8, (2 * 1024 * 1024) // bytes_per_row)   # ~2 MiB blocks
    block_rows = int(min(target_rows, _round_up(rows, 8)))
    block_rows = _round_up(block_rows, 8)
    padded_rows = _round_up(rows, block_rows)

    padded_total = padded_rows * LANES
    if padded_total != total:
        flat = jnp.pad(flat, (0, padded_total - total))     # zeros -> out zeros
    x2d = flat.reshape(padded_rows, LANES)

    kernel = functools.partial(
        _lrn_pointwise_kernel, alpha=float(alpha), beta=float(beta))
    out = pl.pallas_call(
        kernel,
        out_shape=jax.ShapeDtypeStruct((padded_rows, LANES), dtype),
        grid=(padded_rows // block_rows,),
        in_specs=[pl.BlockSpec((block_rows, LANES), lambda i: (i, 0))],
        out_specs=pl.BlockSpec((block_rows, LANES), lambda i: (i, 0)),
        compiler_params=pltpu.CompilerParams(
            dimension_semantics=("parallel",)),
    )(x2d)
    return out.reshape(-1)[:total].reshape(orig_shape)


# ------------------- general odd local_size > 1: separable window -------------------

def _lrn_window_kernel(x_ref, o_ref, *, local_size, alpha, beta):
    x = x_ref[...].astype(jnp.float32)                 # (TB, H, W)
    tb, h, w = x.shape
    pad = (local_size - 1) // 2
    x2 = x * x

    # Separable zero-padded window sum (matches AvgPool2d count_include_pad=True):
    # k shifted adds along W (lanes), then k shifted adds along H (sublanes),
    # instead of k^2 masked roll pairs.
    zc = jnp.zeros((tb, h, pad), jnp.float32)
    x2w = jnp.concatenate([zc, x2, zc], axis=2)        # (TB, H, W + 2*pad)
    row_sum = x2w[:, :, 0:w]
    for dj in range(1, local_size):
        row_sum = row_sum + x2w[:, :, dj:dj + w]

    zr = jnp.zeros((tb, pad, w), jnp.float32)
    rsh = jnp.concatenate([zr, row_sum, zr], axis=1)   # (TB, H + 2*pad, W)
    win = rsh[:, 0:h, :]
    for di in range(1, local_size):
        win = win + rsh[:, di:di + h, :]

    avg = win * (1.0 / float(local_size * local_size))
    base = avg * alpha + 1.0
    o_ref[...] = (x * _inv_pow(base, beta)).astype(o_ref.dtype)


def _lrn_general(x, local_size, alpha, beta, interpret=False):
    n, c, h, w = x.shape
    p = n * c
    x3 = x.reshape(p, h, w)                            # collapse (N, C)

    plane_bytes = h * w * x.dtype.itemsize
    target_planes = max(1, (2 * 1024 * 1024) // plane_bytes)  # ~2 MiB blocks
    tb = 1
    for d in range(1, p + 1):                          # largest divisor of P <= target
        if p % d == 0 and d <= target_planes:
            tb = d

    kernel = functools.partial(
        _lrn_window_kernel, local_size=local_size,
        alpha=float(alpha), beta=float(beta))
    params = None if interpret else pltpu.CompilerParams(
        dimension_semantics=("parallel",))
    out = pl.pallas_call(
        kernel,
        out_shape=jax.ShapeDtypeStruct((p, h, w), x.dtype),
        grid=(p // tb,),
        in_specs=[pl.BlockSpec((tb, h, w), lambda i: (i, 0, 0))],
        out_specs=pl.BlockSpec((tb, h, w), lambda i: (i, 0, 0)),
        compiler_params=params,
        interpret=interpret,
    )(x3)
    return out.reshape(n, c, h, w)


def lrn_pallas(x, local_size=1, alpha=1.0, beta=0.75, ACROSS_CHANNELS=False,
               interpret=False):
    """Within-channel LRN forward (matches the PyTorch module with ACROSS_CHANNELS=False)."""
    assert not ACROSS_CHANNELS, "only within-channel LRN implemented"
    # TODO(synk): ACROSS_CHANNELS=True (AvgPool3d over channels) not implemented.
    assert local_size % 2 == 1, "only odd local_size supported (same-size output)"
    if local_size == 1:
        return _lrn_pointwise(x, alpha, beta)
    return _lrn_general(x, local_size, alpha, beta, interpret=interpret)


def _lrn_reference(x, local_size=1, alpha=1.0, beta=0.75):
    # Pure-JAX reference mirroring PyTorch AvgPool2d(count_include_pad=True).
    pad = (local_size - 1) // 2
    x2 = x.astype(jnp.float32) ** 2
    x2p = jnp.pad(x2, ((0, 0), (0, 0), (pad, pad), (pad, pad)))
    summed = lax.reduce_window(
        x2p, 0.0, lax.add,
        window_dimensions=(1, 1, local_size, local_size),
        window_strides=(1, 1, 1, 1), padding="VALID")
    div = (summed / (local_size * local_size) * alpha + 1.0) ** beta
    return (x.astype(jnp.float32) / div).astype(x.dtype)


if __name__ == "__main__":
    key = jax.random.PRNGKey(0)
    x = jax.random.normal(key, (2, 4, 16, 16), dtype=jnp.float32)

    # Module defaults: local_size=1, alpha=1.0, beta=0.75 -> compiled TPU fast path.
    out = jax.block_until_ready(lrn_pallas(x, local_size=1, alpha=1.0, beta=0.75))
    ref = _lrn_reference(x, local_size=1, alpha=1.0, beta=0.75)
    assert out.shape == x.shape and out.dtype == x.dtype
    assert jnp.allclose(out, ref, atol=1e-5, rtol=1e-5), "mismatch (local_size=1)"

    # General odd-window path: semantics check via Pallas interpret mode.
    out3 = jax.block_until_ready(
        lrn_pallas(x, local_size=3, alpha=2.0, beta=0.75, interpret=True))
    ref3 = _lrn_reference(x, local_size=3, alpha=2.0, beta=0.75)
    assert jnp.allclose(out3, ref3, atol=1e-5, rtol=1e-5), "mismatch (local_size=3)"

    print("KERNEL_OK")
</pallas_src>

<mosaic_0001>
module attributes {stable_mosaic.version = 11 : i64} {
  func.func @_lrn_pointwise_kernel(%arg0: i32, %arg1: memref<8x1024xf32, #tpu.memory_space<vmem>>, %arg2: memref<8x1024xf32, #tpu.memory_space<vmem>>) attributes {dimension_semantics = [#tpu.dimension_semantics<parallel>], iteration_bounds = array<i64: 1>, scalar_prefetch = 0 : i64, scratch_operands = 0 : i64, tpu.core_type = #tpu.core_type<tc>, window_params = [{transform_indices = @transform_0, window_bounds = array<i64: 8, 1024>}, {transform_indices = @transform_1, window_bounds = array<i64: 8, 1024>}]} {
    %c0 = arith.constant 0 : index
    %c0_0 = arith.constant 0 : index
    %0 = vector.load %arg1[%c0, %c0_0] : memref<8x1024xf32, #tpu.memory_space<vmem>>, vector<8x1024xf32>
    %1 = arith.mulf %0, %0 : vector<8x1024xf32>
    %cst = arith.constant 1.000000e+00 : f32
    %2 = vector.broadcast %cst : f32 to vector<8x1024xf32>
    %3 = arith.mulf %1, %2 : vector<8x1024xf32>
    %cst_1 = arith.constant 1.000000e+00 : f32
    %4 = vector.broadcast %cst_1 : f32 to vector<8x1024xf32>
    %5 = arith.addf %3, %4 : vector<8x1024xf32>
    %6 = math.rsqrt %5 : vector<8x1024xf32>
    %7 = math.sqrt %5 : vector<8x1024xf32>
    %8 = math.rsqrt %7 : vector<8x1024xf32>
    %9 = arith.mulf %6, %8 : vector<8x1024xf32>
    %10 = arith.mulf %0, %9 : vector<8x1024xf32>
    %c0_2 = arith.constant 0 : index
    %c0_3 = arith.constant 0 : index
    %11 = vector.load %arg2[%c0_2, %c0_3] : memref<8x1024xf32, #tpu.memory_space<vmem>>, vector<8x1024xf32>
    tpu.vector_store %arg2[%c0_2, %c0_3], %10 {strides = array<i32>} : memref<8x1024xf32, #tpu.memory_space<vmem>>, vector<8x1024xf32>,
    return
  }
  func.func @transform_0(%arg0: i32) -> (i32, i32) {
    %c0_i32 = arith.constant 0 : i32
    %c0_i32_0 = arith.constant 0 : i32
    return %arg0, %c0_i32 : i32, i32
  }
  func.func @transform_1(%arg0: i32) -> (i32, i32) {
    %c0_i32 = arith.constant 0 : i32
    %c0_i32_0 = arith.constant 0 : i32
    return %arg0, %c0_i32 : i32, i32
  }
}

</mosaic_0001>

<bundles_post_ra>
// kernel: tpu_custom_call.1
= control target key start
LH: loop header
LB: loop body
LE: loop exit
PB: predicated region body
PF: predicated region fallthrough
CT: control target
= control target key end

     0   :  { %6 = vsyncpa [#allocation3], 0  ;;  %s334_s0 = inlined_call_operand.hbm [shape: f32[8,1024], index: 0, kind: input, shape index: {}]   ;;  %s335_s1 = inlined_call_operand.hbm [shape: f32[8,1024], index: 1, kind: output, shape index: {}]  }
   0x1   :  { %7 = vsyncpa [#allocation4], 0  ;;  %s234_s6 = smov [#allocation2]  }
   0x2   :  { %s14_s7 = sshll.u32 %s234_s6, 4  ;;  %s15_s7 = int_to_ptr.vmem [resolvable:$true] %s14_s7 }
   0x3   :  { %s198_s8 = scalar_lea.vmem %s15_s7, 1024  ;;  %p203_p1 = scmp.lt.s32.totalorder %s15_s7, %s15_s7 }
   0x4   :  { %p199_p0 = scmp.ne.s32.totalorder %s15_s7, %s198_s8  ;;  %p204_p2 = scmp.lt.s32.totalorder %s198_s8, %s198_s8 }
   0x6   :  { %p205_p3 = por %p204_p2, %p203_p1 }
   0x8   :  { %p206_p4 = pnand %p205_p3, %p199_p0 }
   0xa   :  { %209 = shalt.err (!%p206_p4)
}
   0xb   :  { %17 = dma.hbm_to_vmem [thread:$0]  %s334_s0, 1024, %s15_s7, [#allocation3]  }
   0xc   :  { %230 = dma.done.wait [#allocation3], 1024  }
   0xd   :  { %231 = vsyncadd [#allocation3], 4294966272  ;;  %v249_v0 = vld [vmem:[#allocation2] sm:$0xff]  ;;  %v251_v1 = vld [vmem:[#allocation2 + $0x8] sm:$0xff]  ;;  %s235_s0 = smov [#allocation5]  }
   0xe   :  { %v253_v2 = vld [vmem:[#allocation2 + $0x10] sm:$0xff]  ;;  %v29_v3 = vmul.f32 %v249_v0, %v249_v0  ;;  %v30_v4 = vmul.f32 %v251_v1, %v251_v1  ;;  %v261_v6 = vld [vmem:[#allocation2 + $0x18] sm:$0xff]  ;;  %v263_v7 = vld [vmem:[#allocation2 + $0x20] sm:$0xff]  ;;  %s147_s11 = sshll.u32 %s235_s0, 4  ;;  %s148_s11 = int_to_ptr.vmem [resolvable:$true] %s147_s11 }
   0xf   :  { %v31_v5 = vmul.f32 %v253_v2, %v253_v2  ;;  %v265_v8 = vld [vmem:[#allocation2 + $0x28] sm:$0xff]  ;;  %v32_v9 = vmul.f32 %v261_v6, %v261_v6  ;;  %v33_v10 = vmul.f32 %v263_v7, %v263_v7  ;;  %v273_v16 = vld [vmem:[#allocation2 + $0x30] sm:$0xff]  ;;  %v275_v17 = vld [vmem:[#allocation2 + $0x38] sm:$0xff]  ;;  %s210_s12 = scalar_lea.vmem %s148_s11, 1024  ;;  %p215_p6 = scmp.lt.s32.totalorder %s148_s11, %s148_s11 }
  0x10   :  { %v34_v11 = vmul.f32 %v265_v8, %v265_v8  ;;  %v37_v12 = vadd.f32 1.0, %v29_v3  ;;  %v38_v13 = vadd.f32 1.0, %v30_v4  ;;  %v35_v20 = vmul.f32 %v273_v16, %v273_v16  ;;  %p211_p5 = scmp.ne.s32.totalorder %s148_s11, %s210_s12  ;;  %p216_p7 = scmp.lt.s32.totalorder %s210_s12, %s210_s12 }
  0x11   :  { %v39_v14 = vadd.f32 1.0, %v31_v5  ;;  %v40_v15 = vadd.f32 1.0, %v32_v9  ;;  %v41_v18 = vadd.f32 1.0, %v33_v10  ;;  %v36_v21 = vmul.f32 %v275_v17, %v275_v17 }
  0x12   :  { %158 = vrsqrt.f32 %v37_v12  ;;  %v277_v19 = vadd.f32 1.0, %v34_v11  ;;  %v284_v22 = vadd.f32 1.0, %v35_v20  ;;  %vm55_vm0 = vcmp.eq.f32.partialorder %v37_v12, inf  ;;  %p217_p8 = por %p216_p7, %p215_p6 }
  0x13   :  { %160 = vrsqrt.f32 %v38_v13  ;;  %v286_v23 = vadd.f32 1.0, %v36_v21  ;;  %vm57_vm1 = vcmp.eq.f32.partialorder %v37_v12, 0.0  ;;  %v58_v24 = vand.u32 2147483648, %v37_v12 }
  0x14   :  { %162 = vrsqrt.f32 %v39_v14  ;;  %vm62_vm2 = vcmp.eq.f32.partialorder %v38_v13, inf  ;;  %vm64_vm3 = vcmp.eq.f32.partialorder %v38_v13, 0.0  ;;  %v65_v25 = vand.u32 2147483648, %v38_v13  ;;  %p218_p9 = pnand %p217_p8, %p211_p5 }
  0x15   :  { %164 = vrsqrt.f32 %v40_v15  ;;  %vm69_vm4 = vcmp.eq.f32.partialorder %v39_v14, inf  ;;  %vm71_vm5 = vcmp.eq.f32.partialorder %v39_v14, 0.0  ;;  %v72_v27 = vand.u32 2147483648, %v39_v14 }
  0x16   :  { %166 = vrsqrt.f32 %v41_v18  ;;  %vm76_vm6 = vcmp.eq.f32.partialorder %v40_v15, inf  ;;  %vm78_vm7 = vcmp.eq.f32.partialorder %v40_v15, 0.0  ;;  %v79_v30 = vand.u32 2147483648, %v40_v15 }
  0x17   :  { %168 = vrsqrt.f32 %v277_v19  ;;  %vm83_vm8 = vcmp.eq.f32.partialorder %v41_v18, inf  ;;  %vm85_vm9 = vcmp.eq.f32.partialorder %v41_v18, 0.0  ;;  %v86_v33 = vand.u32 2147483648, %v41_v18 }
  0x18   :  { %170 = vrsqrt.f32 %v284_v22  ;;  %vm90_vm10 = vcmp.eq.f32.partialorder %v277_v19, inf  ;;  %vm92_vm11 = vcmp.eq.f32.partialorder %v277_v19, 0.0  ;;  %v93_v37 = vand.u32 2147483648, %v277_v19 }
  0x19   :  { %172 = vrsqrt.f32 %v286_v23  ;;  %vm97_vm12 = vcmp.eq.f32.partialorder %v284_v22, inf  ;;  %vm99_vm13 = vcmp.eq.f32.partialorder %v284_v22, 0.0  ;;  %v100_v51 = vand.u32 2147483648, %v284_v22 }
  0x1a   :  { %vm104_vm14 = vcmp.eq.f32.partialorder %v286_v23, inf  ;;  %v107_v58 = vand.u32 2147483648, %v286_v23  ;;  %vm106_vm15 = vcmp.eq.f32.partialorder %v286_v23, 0.0 }
  0x1f   :  { %v159_v26 = vpop.eup %158 }
  0x20   :  { %v161_v28 = vpop.eup %160  ;;  %v54_v29 = vmul.f32 %v159_v26, %v37_v12 }
  0x21   :  { %v163_v31 = vpop.eup %162  ;;  %v61_v32 = vmul.f32 %v161_v28, %v38_v13 }
  0x22   :  { %v165_v34 = vpop.eup %164  ;;  %v56_v35 = vsel %vm55_vm0, %v37_v12, %v54_v29  ;;  %v68_v36 = vmul.f32 %v163_v31, %v39_v14 }
  0x23   :  { %v167_v38 = vpop.eup %166  ;;  %v59_v39 = vsel %vm57_vm1, %v58_v24, %v56_v35  ;;  %v63_v40 = vsel %vm62_vm2, %v38_v13, %v61_v32  ;;  %v75_v41 = vmul.f32 %v165_v34, %v40_v15 }
  0x24   :  { %v169_v42 = vpop.eup %168  ;;  %174 = vrsqrt.f32 %v59_v39  ;;  %v66_v43 = vsel %vm64_vm3, %v65_v25, %v63_v40  ;;  %v70_v44 = vsel %vm69_vm4, %v39_v14, %v68_v36  ;;  %v82_v45 = vmul.f32 %v167_v38, %v41_v18 }
  0x25   :  { %176 = vrsqrt.f32 %v66_v43  ;;  %v73_v46 = vsel %vm71_vm5, %v72_v27, %v70_v44  ;;  %v77_v47 = vsel %vm76_vm6, %v40_v15, %v75_v41  ;;  %v89_v48 = vmul.f32 %v169_v42, %v277_v19  ;;  %v171_v52 = vpop.eup %170 }
  0x26   :  { %178 = vrsqrt.f32 %v73_v46  ;;  %v80_v49 = vsel %vm78_vm7, %v79_v30, %v77_v47  ;;  %v84_v50 = vsel %vm83_vm8, %v41_v18, %v82_v45  ;;  %v173_v55 = vpop.eup %172  ;;  %v96_v57 = vmul.f32 %v171_v52, %v284_v22 }
  0x27   :  { %180 = vrsqrt.f32 %v80_v49  ;;  %v87_v53 = vsel %vm85_vm9, %v86_v33, %v84_v50  ;;  %v91_v54 = vsel %vm90_vm10, %v277_v19, %v89_v48  ;;  %v103_v59 = vmul.f32 %v173_v55, %v286_v23 }
  0x28   :  { %182 = vrsqrt.f32 %v87_v53  ;;  %v94_v56 = vsel %vm92_vm11, %v93_v37, %v91_v54  ;;  %v98_v60 = vsel %vm97_vm12, %v284_v22, %v96_v57 }
  0x29   :  { %184 = vrsqrt.f32 %v94_v56  ;;  %v101_v61 = vsel %vm99_vm13, %v100_v51, %v98_v60  ;;  %v105_v62 = vsel %vm104_vm14, %v286_v23, %v103_v59 }
  0x2a   :  { %186 = vrsqrt.f32 %v101_v61  ;;  %v108_v63 = vsel %vm106_vm15, %v107_v58, %v105_v62 }
  0x2b   :  { %188 = vrsqrt.f32 %v108_v63 }
  0x31   :  { %v175_v3 = vpop.eup %174 }
  0x32   :  { %v177_v4 = vpop.eup %176  ;;  %v117_v5 = vmul.f32 %v175_v3, %v159_v26 }
  0x33   :  { %v179_v9 = vpop.eup %178  ;;  %v118_v10 = vmul.f32 %v177_v4, %v161_v28 }
  0x34   :  { %v181_v11 = vpop.eup %180  ;;  %v125_v12 = vmul.f32 %v117_v5, %v249_v0  ;;  %v119_v13 = vmul.f32 %v179_v9, %v163_v31 }
  0x35   :  { %v183_v14 = vpop.eup %182  ;;  %v126_v15 = vmul.f32 %v118_v10, %v251_v1  ;;  %v120_v18 = vmul.f32 %v181_v11, %v165_v34 }
  0x36   :  { %v185_v19 = vpop.eup %184  ;;  %133 = vst [vmem:[#allocation5] sm:$0xff] %v125_v12  ;;  %v127_v20 = vmul.f32 %v119_v13, %v253_v2  ;;  %v121_v21 = vmul.f32 %v183_v14, %v167_v38 }
  0x37   :  { %134 = vst [vmem:[#allocation5 + $0x8] sm:$0xff] %v126_v15  ;;  %v128_v22 = vmul.f32 %v120_v18, %v261_v6  ;;  %v122_v23 = vmul.f32 %v185_v19, %v169_v42  ;;  %v187_v25 = vpop.eup %186 }
  0x38   :  { %135 = vst [vmem:[#allocation5 + $0x10] sm:$0xff] %v127_v20  ;;  %v129_v24 = vmul.f32 %v121_v21, %v263_v7  ;;  %v189_v26 = vpop.eup %188  ;;  %v123_v1 = vmul.f32 %v187_v25, %v171_v52 }
  0x39   :  { %136 = vst [vmem:[#allocation5 + $0x18] sm:$0xff] %v128_v22  ;;  %v130_v0 = vmul.f32 %v122_v23, %v265_v8  ;;  %v124_v27 = vmul.f32 %v189_v26, %v173_v55 }
  0x3a   :  { %137 = vst [vmem:[#allocation5 + $0x20] sm:$0xff] %v129_v24  ;;  %v131_v2 = vmul.f32 %v123_v1, %v273_v16 }
  0x3b   :  { %138 = vst [vmem:[#allocation5 + $0x28] sm:$0xff] %v130_v0  ;;  %v132_v28 = vmul.f32 %v124_v27, %v275_v17 }
  0x3c   :  { %139 = vst [vmem:[#allocation5 + $0x30] sm:$0xff] %v131_v2 }
  0x3d   :  { %140 = vst [vmem:[#allocation5 + $0x38] sm:$0xff] %v132_v28 }
  0x3e   :  { %221 = shalt.err (!%p218_p9)
}
  0x3f   :  { %150 = dma.vmem_to_hbm [thread:$0]  %s148_s11, 1024, %s335_s1, [#allocation4]  }
  0x40   :  { %232 = dma.done.wait [#allocation4], 1024  }
  0x41   :  { %233 = vsyncadd [#allocation4], 4294966272 }
  0x42   :  { %154 = vsyncpa [#allocation3], 1 }
  0x43   :  { %155 = vsyncpa [#allocation4], 1 }

</bundles_post_ra>
